<compile_context>
chip_gen: v5e
topology: v5e:2x2
jax: 0.10.0
libtpu: 0.0.40
codegen_flags: <defaults>
</compile_context>

<pallas_src>
import jax
import jax.numpy as jnp
from jax.experimental import pallas as pl
from jax.experimental.pallas import tpu as pltpu

_LANES = 128                          # vreg lane width; last dim of the slab maps here
_SUBLANES = 8                         # 32-bit sublanes per vreg
_BYTES_PER_BUFFER = 4 * 1024 * 1024   # ~4 MiB per pipeline buffer (86%+ of HBM roofline)
_SINGLE_BLOCK_BYTES = 1 * 1024 * 1024 # below this, one block: splitting is pure per-step overhead
_VMEM_LIMIT_BYTES = 32 * 1024 * 1024  # 2 x (in+out) x 4 MiB = 16 MiB fits; raise v5e's 16 MiB default


# ---------------------------------------------------------------------------
# Pallas kernel: dx = -lambda * g   (elementwise, lambda read from SMEM)
# ---------------------------------------------------------------------------
def _neg_scale_kernel(lam_ref, g_ref, o_ref):
    neg_lam = (-lam_ref[0]).astype(o_ref.dtype)   # scalar load from SMEM, native dtype
    o_ref[...] = g_ref[...] * neg_lam


# ---------------------------------------------------------------------------
# Wrapper glue
# ---------------------------------------------------------------------------
def _choose_block_rows(rows, dtype):
    """Byte-budgeted block rows; even grid >= 4 when tiling (v7x 2-TC balance)."""
    itemsize = jnp.dtype(dtype).itemsize
    row_bytes = _LANES * itemsize
    packed = _SUBLANES * max(1, 4 // itemsize)   # sublane granularity: 8 f32 / 16 bf16 / 32 i8
    if rows * row_bytes <= _SINGLE_BLOCK_BYTES:
        # Single block equal to the full array dims — legal even if rows % 8 != 0.
        return rows
    max_rows = max(packed, (_BYTES_PER_BUFFER // row_bytes) // packed * packed)
    nblocks = pl.cdiv(rows, max_rows)
    nblocks = max(4, nblocks + (nblocks % 2))    # even and >= 4
    block_rows = pl.cdiv(pl.cdiv(rows, nblocks), packed) * packed
    return min(block_rows, max_rows)


def _neg_scale(g, lam):
    """dx = -lam * g for an arbitrarily shaped gradient tensor."""
    n = g.size
    lam = jnp.asarray(lam, jnp.float32)
    if n == 0 or n % _LANES != 0:
        # Ragged / degenerate sizes: plain JAX (fully fusable by XLA, no extra
        # pad/slice HBM passes). This is the fusion-friendly path the perf
        # review recommends for anything the slab kernel can't take for free.
        return (-lam).astype(g.dtype) * g

    slab = g.reshape(-1, _LANES)                 # free, lane-dense view
    rows = slab.shape[0]
    block_rows = _choose_block_rows(rows, slab.dtype)
    grid = (pl.cdiv(rows, block_rows),)
    lam_arr = lam.reshape(1)

    out_slab = pl.pallas_call(
        _neg_scale_kernel,
        out_shape=jax.ShapeDtypeStruct(slab.shape, slab.dtype),
        grid=grid,
        in_specs=[
            pl.BlockSpec(memory_space=pltpu.MemorySpace.SMEM),     # lambda scalar
            pl.BlockSpec((block_rows, _LANES), lambda i: (i, 0)),  # grads tile
        ],
        out_specs=pl.BlockSpec((block_rows, _LANES), lambda i: (i, 0)),
        compiler_params=pltpu.CompilerParams(
            dimension_semantics=("parallel",),    # shard row blocks across v7x's 2 TCs
            allow_input_fusion=[False, True],     # let the cotangent producer fuse into input 1
            vmem_limit_bytes=_VMEM_LIMIT_BYTES,
        ),
    )(lam_arr, slab)

    return out_slab.reshape(g.shape)


# ---------------------------------------------------------------------------
# custom_vjp: forward identity, backward -lambda * g
# ---------------------------------------------------------------------------
@jax.custom_vjp
def _grl_prim(x, lam):
    return x  # forward: identity — deliberately NOT a kernel (saves a full HBM pass)


def _grl_fwd(x, lam):
    return x, lam


def _grl_bwd(lam, g):
    # dx = -lambda * g ; lambda gets a zero cotangent (PyTorch returns None —
    # equivalent here since lambda is never trained).
    return _neg_scale(g, lam), jnp.zeros_like(lam)


_grl_prim.defvjp(_grl_fwd, _grl_bwd)


def gradient_reversal(x, lambda_=1.0):
    # lambda enters as a traced f32 array and is read from SMEM in the kernel,
    # so annealing lambda (DANN warm-up) never triggers a recompile.
    return _grl_prim(x, jnp.asarray(lambda_, jnp.float32))


class GradientReversal:
    """JAX/Pallas port of the PyTorch GradientReversal module."""

    def __init__(self, lambda_=1.0):
        self.lambda_ = float(lambda_)  # no learnable parameters

    def __call__(self, x):
        return gradient_reversal(x, self.lambda_)


# ---------------------------------------------------------------------------
# Demo / self-test
# ---------------------------------------------------------------------------
if __name__ == "__main__":
    key = jax.random.PRNGKey(0)
    # NCHW, small conv-feature-map shape (matches the MDA_Net usage scale).
    x = jax.random.normal(key, (2, 4, 16, 16), dtype=jnp.float32)

    grl = GradientReversal(lambda_=1.0)

    # Forward: exact identity, no kernel launch.
    y = jax.block_until_ready(grl(x))
    assert y.shape == x.shape and y.dtype == x.dtype
    assert bool(jnp.all(y == x))

    # Backward: d(sum(grl(x)))/dx == -lambda everywhere (single-block Pallas path).
    dx = jax.block_until_ready(jax.grad(lambda inp: jnp.sum(grl(inp)))(x))
    assert bool(jnp.allclose(dx, -1.0 * jnp.ones_like(x)))

    # Different lambda reuses the same compiled kernel (lambda is an SMEM operand).
    grl2 = GradientReversal(lambda_=0.5)
    dx2 = jax.block_until_ready(jax.grad(lambda inp: jnp.sum(grl2(inp)))(x))
    assert bool(jnp.allclose(dx2, -0.5 * jnp.ones_like(x)))

    # Multi-block path: 512x2048 f32 -> 8192 rows -> even grid of 4 tiles.
    xl = jax.random.normal(jax.random.PRNGKey(1), (512, 2048), dtype=jnp.float32)
    w = jax.random.normal(jax.random.PRNGKey(2), (512, 2048), dtype=jnp.float32)
    dxl = jax.block_until_ready(jax.grad(lambda inp: jnp.sum(grl(inp) * w))(xl))
    assert bool(jnp.allclose(dxl, -w))

    # Ragged size (not a multiple of 128) -> fused plain-JAX fallback path.
    xr = jax.random.normal(jax.random.PRNGKey(3), (3, 5, 7), dtype=jnp.float32)
    dxr = jax.block_until_ready(jax.grad(lambda inp: jnp.sum(grl2(inp)))(xr))
    assert bool(jnp.allclose(dxr, -0.5 * jnp.ones_like(xr)))

    print("KERNEL_OK")
</pallas_src>

<mosaic_0001>
module attributes {stable_mosaic.version = 11 : i64} {
  func.func @_neg_scale_kernel(%arg0: i32, %arg1: memref<1xf32, #tpu.memory_space<smem>>, %arg2: memref<16x128xf32, #tpu.memory_space<vmem>>, %arg3: memref<16x128xf32, #tpu.memory_space<vmem>>) attributes {dimension_semantics = [#tpu.dimension_semantics<parallel>], iteration_bounds = array<i64: 1>, scalar_prefetch = 0 : i64, scratch_operands = 0 : i64, tpu.core_type = #tpu.core_type<tc>, window_params = [{transform_indices = @transform_0, window_bounds = array<i64: 1>}, {transform_indices = @transform_1, window_bounds = array<i64: 16, 128>}, {transform_indices = @transform_2, window_bounds = array<i64: 16, 128>}]} {
    %c0 = arith.constant 0 : index
    %0 = memref.load %arg1[%c0] : memref<1xf32, #tpu.memory_space<smem>>
    %cst = arith.constant 0.000000e+00 : f32
    %1 = arith.subf %cst, %0 : f32
    %c0_0 = arith.constant 0 : index
    %c0_1 = arith.constant 0 : index
    %2 = vector.load %arg2[%c0_0, %c0_1] : memref<16x128xf32, #tpu.memory_space<vmem>>, vector<16x128xf32>
    %3 = vector.broadcast %1 : f32 to vector<16x128xf32>
    %4 = arith.mulf %2, %3 : vector<16x128xf32>
    %c0_2 = arith.constant 0 : index
    %c0_3 = arith.constant 0 : index
    %5 = vector.load %arg3[%c0_2, %c0_3] : memref<16x128xf32, #tpu.memory_space<vmem>>, vector<16x128xf32>
    tpu.vector_store %arg3[%c0_2, %c0_3], %4 {strides = array<i32>} : memref<16x128xf32, #tpu.memory_space<vmem>>, vector<16x128xf32>,
    return
  }
  func.func @transform_0(%arg0: i32) -> i32 {
    %c0_i32 = arith.constant 0 : i32
    %c0_i32_0 = arith.constant 0 : i32
    return %c0_i32 : i32
  }
  func.func @transform_1(%arg0: i32) -> (i32, i32) {
    %c0_i32 = arith.constant 0 : i32
    %c0_i32_0 = arith.constant 0 : i32
    return %arg0, %c0_i32 : i32, i32
  }
  func.func @transform_2(%arg0: i32) -> (i32, i32) {
    %c0_i32 = arith.constant 0 : i32
    %c0_i32_0 = arith.constant 0 : i32
    return %arg0, %c0_i32 : i32, i32
  }
}

</mosaic_0001>

<bundles_post_ra>
// kernel: tpu_custom_call.1
= control target key start
LH: loop header
LB: loop body
LE: loop exit
PB: predicated region body
PF: predicated region fallthrough
CT: control target
= control target key end

     0   :  { %8 = vsyncpa [#allocation4], 0  ;;  %s141_s0 = inlined_call_operand.<no memory space> [shape: f32[1], index: 0, kind: input, shape index: {}]   ;;  %s142_s1 = inlined_call_operand.hbm [shape: f32[16,128], index: 1, kind: input, shape index: {}]   ;;  %s143_s2 = inlined_call_operand.hbm [shape: f32[16,128], index: 2, kind: output, shape index: {}]  }
   0x1   :  { %9 = vsyncpa [#allocation5], 0  ;;  %s16_s11 = sshll.u32 %s142_s1, 4  ;;  %s113_s12 = smov [#allocation3]   ;;  %s17_s11 = int_to_ptr.hbm [resolvable:$true] %s16_s11 }
   0x2   :  { %s18_s13 = sshll.u32 %s113_s12, 4  ;;  %s114_s14 = smov 128   ;;  %s19_s13 = int_to_ptr.vmem [resolvable:$true] %s18_s13 }
   0x3   :  { %s115_s15 = smov 8  }
   0x4   :  { %24 = dma.hbm_to_vmem [thread:$0]  %s17_s11, 256, %s19_s13, [#allocation4], %s114_s14, %s114_s14, %s115_s15  }
   0x5   :  { %109 = dma.done.wait [#allocation4], 256  }
   0x6   :  { %110 = vsyncadd [#allocation4], 4294967040  ;;  %s30_s18 = ssub.f32 0.0, %s141_s0  ;;  %s116_s19 = smov [#allocation6]   ;;  %v31_v1 = vld [vmem:[#allocation3] sm:$0xff]  ;;  %v32_v2 = vld [vmem:[#allocation3 + $0x8] sm:$0xff] }
   0x7   :  { %s42_s20 = sshll.u32 %s116_s19, 4  ;;  %s44_s1 = sshll.u32 %s143_s2, 4  ;;  %s43_s20 = int_to_ptr.vmem [resolvable:$true] %s42_s20  ;;  %s45_s1 = int_to_ptr.hbm [resolvable:$true] %s44_s1 }
   0x8   :  { %v33_v0 = vstv %s30_s18 }
   0x9   :  { %v34_v3 = vmul.f32 %v33_v0, %v31_v1  ;;  %v35_v4 = vmul.f32 %v33_v0, %v32_v2 }
   0xb   :  { %36 = vst [vmem:[#allocation6] sm:$0xff] %v34_v3 }
   0xc   :  { %37 = vst [vmem:[#allocation6 + $0x8] sm:$0xff] %v35_v4 }
   0xd   :  { %50 = dma.vmem_to_hbm [thread:$0]  %s43_s20, 256, %s45_s1, [#allocation5], %s114_s14, %s114_s14, %s115_s15  }
   0xe   :  { %111 = dma.done.wait [#allocation5], 256  }
   0xf   :  { %112 = vsyncadd [#allocation5], 4294967040 }
  0x10   :  { %55 = vsyncpa [#allocation4], 1 }
  0x11   :  { %56 = vsyncpa [#allocation5], 1 }

</bundles_post_ra>
